<compile_context>
chip_gen: v7x
topology: tpu7x:2x2x1
jax: 0.10.0
libtpu: 0.0.40
codegen_flags: <defaults>
</compile_context>

<pallas_src>
import jax
import jax.numpy as jnp
import numpy as np
from jax.experimental import pallas as pl
from jax.experimental.pallas import tpu as pltpu

# ---- configuration forced by the module's forward (see analysis above) -------
IN_CHANNELS = 3
NUM_HEADS = 1
HEAD_DIM = IN_CHANNELS // NUM_HEADS      # == 3 (q/k/v are taken off this axis)
WINDOW = (1, 1)
N_TOKENS = IN_CHANNELS                   # proj Conv1d(C, C) forces N == C
SCALE = HEAD_DIM ** -0.5                 # qk_scale is None -> head_dim**-0.5
BATCH = 2


def _relative_position_index(win):
    """Same construction as the module's __init__ (numpy, static)."""
    Wh, Ww = win
    coords = np.stack(np.meshgrid(np.arange(Wh), np.arange(Ww), indexing="ij"))
    flat = coords.reshape(2, -1)
    rel = flat[:, :, None] - flat[:, None, :]
    rel = rel.transpose(1, 2, 0).astype(np.int64)
    rel[:, :, 0] += Wh - 1
    rel[:, :, 1] += Ww - 1
    rel[:, :, 0] *= 2 * Ww - 1
    return rel.sum(-1)                    # (Wh*Ww, Wh*Ww)


# --------------------------- init-time parameter packing -----------------------
def pack_params(params):
    """Build the single packed parameter block ONCE (host/numpy, no per-call XLA ops).

    Layout, shape (4C, (C+1)*N), f32:
      rows 0:3C,  cols c*N:(c+1)*N  = w_qkv[:, c]  pre-broadcast across the N lanes
      rows 0:3C,  cols C*N:(C+1)*N  = b_qkv        pre-broadcast across the N lanes
      rows 3C:4C, cols n*N:(n+1)*N  = w_proj[:, n] pre-broadcast across the N lanes
      rows 3C:4C, cols C*N:(C+1)*N  = b_proj       pre-broadcast across the N lanes

    Pre-broadcasting here makes every MAC operand inside the kernel a plain
    contiguous load (no in-kernel lane broadcast_in_dim per unrolled iteration).

    The relative_position_bias is intentionally NOT packed: at the only
    type-checking configuration it is added to a logit that then passes through a
    softmax over a size-1 axis (num_heads == 1), so attn == 1.0 exactly and the
    bias provably cannot affect the output.
    """
    C, N = IN_CHANNELS, N_TOKENS
    w_qkv = np.asarray(params["w_qkv"], np.float32)    # (3C, C)
    b_qkv = np.asarray(params["b_qkv"], np.float32)    # (3C,)
    w_proj = np.asarray(params["w_proj"], np.float32)  # (C, C)
    b_proj = np.asarray(params["b_proj"], np.float32)  # (C,)
    pm = np.zeros((4 * C, (C + 1) * N), np.float32)
    for c in range(C):
        pm[0:3 * C, c * N:(c + 1) * N] = w_qkv[:, c:c + 1]
        pm[3 * C:4 * C, c * N:(c + 1) * N] = w_proj[:, c:c + 1]
    pm[0:3 * C, C * N:(C + 1) * N] = b_qkv[:, None]
    pm[3 * C:4 * C, C * N:(C + 1) * N] = b_proj[:, None]
    return jnp.asarray(pm)


# ------------------------------ Pallas kernel ---------------------------------
def window_attention_kernel(x_ref, pm_ref, o_ref):
    """Gridless, single-VMEM-block WindowAttention forward.

    x_ref  : (B, C, N) activations
    pm_ref : (4C, (C+1)*N) packed parameters (see pack_params)
    o_ref  : (B, C, N)
    """
    # TODO(synk): attn_drop / proj_drop (p=0.0 -> identity in eval) and the
    # relative-position-bias gather (provable no-op at H == 1) are not materialized.
    B = x_ref.shape[0]                     # generic over batch; unrolled below
    C, N = IN_CHANNELS, N_TOKENS

    # Loop-invariant parameter slabs: each is one contiguous VMEM load (already
    # lane-broadcast at init), hoisted out of the batch loop.
    w_qkv_slab = [pm_ref[0:3 * C, c * N:(c + 1) * N] for c in range(C)]        # (3C, N)
    b_qkv_slab = pm_ref[0:3 * C, C * N:(C + 1) * N]                            # (3C, N)
    w_proj_slab = [pm_ref[3 * C:4 * C, n * N:(n + 1) * N] for n in range(C)]   # (C, N)
    b_proj_slab = pm_ref[3 * C:4 * C, C * N:(C + 1) * N]                       # (C, N)

    for b in range(B):                     # B tiny & static -> fully unrolled
        x_b = x_ref[b]                     # (C, N)

        # qkv 1x1 Conv1d on the VPU (contraction length C == 3, unrolled):
        #   y[o, t] = b_qkv[o] + sum_c w_qkv[o, c] * x[b, c, t]
        y = b_qkv_slab
        for c in range(C):
            # (1, N) activation row sublane-broadcasts against the (3C, N) slab.
            y = y + w_qkv_slab[c] * x_b[c:c + 1, :]

        # Attention collapses to the identity at this configuration:
        #   q = y[0:C]*scale and k = y[C:2C] feed attn = softmax(q.k^T + rpb) taken
        #   over a size-1 axis (num_heads == 1), which is exactly 1.0, so
        #   (attn @ v) == v, and (attn@v).transpose(1,2).reshape(B,N,C) is likewise
        #   the identity at H == 1.  v is the third row-block of the qkv output.
        v = y[2 * C:3 * C, :]              # (C, N)  == ctx

        # proj 1x1 Conv1d: treats the window-token axis (== C) as its channel axis.
        #   out[o, t] = b_proj[o] + sum_n w_proj[o, n] * v[n, t]
        out = b_proj_slab
        for n in range(C):
            out = out + w_proj_slab[n] * v[n:n + 1, :]

        o_ref[b] = out.astype(o_ref.dtype)


# ------------------------------ forward wrapper --------------------------------
@jax.jit
def window_attention_fwd(x, pm):
    """Per-call path: exactly one pallas_call on (x, pm); pm comes from pack_params."""
    B, C, N = x.shape
    assert (C, N) == (IN_CHANNELS, N_TOKENS)
    return pl.pallas_call(
        window_attention_kernel,
        out_shape=jax.ShapeDtypeStruct((B, C, N), x.dtype),
        in_specs=[
            pl.BlockSpec(memory_space=pltpu.MemorySpace.VMEM),   # x, whole array
            pl.BlockSpec(memory_space=pltpu.MemorySpace.VMEM),   # packed params
        ],
        out_specs=pl.BlockSpec(memory_space=pltpu.MemorySpace.VMEM),
    )(x, pm)


# ------------------------- pure-JAX literal reference ---------------------------
def ref_forward(x, params):
    B, C, N = x.shape
    H, hd = NUM_HEADS, HEAD_DIM
    y = jnp.einsum("oc,bcn->bon", params["w_qkv"], x) + params["b_qkv"][None, :, None]
    qkv = y.reshape(B, H, hd, N, 3).transpose(2, 0, 3, 1, 4)
    q, k, v = qkv[0], qkv[1], qkv[2]
    q = q * SCALE
    attn = jnp.matmul(q, jnp.swapaxes(k, -2, -1))
    rel_idx = jnp.asarray(_relative_position_index(WINDOW))
    Nw = WINDOW[0] * WINDOW[1]
    rpb = params["rpb_table"][rel_idx.reshape(-1)].reshape(Nw, Nw, -1)
    rpb = jnp.transpose(rpb, (2, 0, 1))
    attn = attn + rpb[None]
    attn = jax.nn.softmax(attn, axis=-1)
    out = jnp.matmul(attn, v)
    out = jnp.swapaxes(out, 1, 2).reshape(B, N, C)
    out = jnp.einsum("oc,bcn->bon", params["w_proj"], out) + params["b_proj"][None, :, None]
    return out


if __name__ == "__main__":
    key = jax.random.PRNGKey(0)
    k1, k2, k3, k4, k5, k6 = jax.random.split(key, 6)
    params = {
        # qkv: Conv1d(C, 3C, k=1) -> weight (3C, C), bias (3C,)
        "w_qkv": 0.1 * jax.random.normal(k1, (3 * IN_CHANNELS, IN_CHANNELS), jnp.float32),
        "b_qkv": 0.1 * jax.random.normal(k2, (3 * IN_CHANNELS,), jnp.float32),
        # proj: Conv1d(C, C, k=1)
        "w_proj": 0.1 * jax.random.normal(k3, (IN_CHANNELS, IN_CHANNELS), jnp.float32),
        "b_proj": 0.1 * jax.random.normal(k4, (IN_CHANNELS,), jnp.float32),
        # relative_position_bias_table: ((2*Wh-1)*(2*Ww-1), num_heads)
        "rpb_table": 0.02 * jax.random.normal(
            k5, ((2 * WINDOW[0] - 1) * (2 * WINDOW[1] - 1), NUM_HEADS), jnp.float32),
    }
    x = jax.random.normal(k6, (BATCH, IN_CHANNELS, N_TOKENS), jnp.float32)

    pm = pack_params(params)          # init-time, once; NOT on the per-call path

    out = jax.block_until_ready(window_attention_fwd(x, pm))
    ref = jax.block_until_ready(ref_forward(x, params))
    assert out.shape == (BATCH, IN_CHANNELS, N_TOKENS)
    np.testing.assert_allclose(np.asarray(out), np.asarray(ref), rtol=1e-5, atol=1e-5)
    print("KERNEL_OK")
</pallas_src>

<mosaic_0001>
module attributes {stable_mosaic.version = 11 : i64} {
  func.func @window_attention_kernel(%arg0: memref<2x3x3xf32, #tpu.memory_space<vmem>>, %arg1: memref<12x12xf32, #tpu.memory_space<vmem>>, %arg2: memref<2x3x3xf32, #tpu.memory_space<vmem>>) attributes {dimension_semantics = [], scalar_prefetch = 0 : i64, scratch_operands = 0 : i64, tpu.core_type = #tpu.core_type<tc>} {
    %c0 = arith.constant 0 : index
    %c0_0 = arith.constant 0 : index
    %0 = vector.load %arg1[%c0, %c0_0] : memref<12x12xf32, #tpu.memory_space<vmem>>, vector<9x3xf32>
    %c0_1 = arith.constant 0 : index
    %c3 = arith.constant 3 : index
    %1 = vector.load %arg1[%c0_1, %c3] : memref<12x12xf32, #tpu.memory_space<vmem>>, vector<9x3xf32>
    %c0_2 = arith.constant 0 : index
    %c6 = arith.constant 6 : index
    %2 = vector.load %arg1[%c0_2, %c6] : memref<12x12xf32, #tpu.memory_space<vmem>>, vector<9x3xf32>
    %c0_3 = arith.constant 0 : index
    %c9 = arith.constant 9 : index
    %3 = vector.load %arg1[%c0_3, %c9] : memref<12x12xf32, #tpu.memory_space<vmem>>, vector<9x3xf32>
    %c9_4 = arith.constant 9 : index
    %c0_5 = arith.constant 0 : index
    %4 = vector.load %arg1[%c9_4, %c0_5] : memref<12x12xf32, #tpu.memory_space<vmem>>, vector<3x3xf32>
    %c9_6 = arith.constant 9 : index
    %c3_7 = arith.constant 3 : index
    %5 = vector.load %arg1[%c9_6, %c3_7] : memref<12x12xf32, #tpu.memory_space<vmem>>, vector<3x3xf32>
    %c9_8 = arith.constant 9 : index
    %c6_9 = arith.constant 6 : index
    %6 = vector.load %arg1[%c9_8, %c6_9] : memref<12x12xf32, #tpu.memory_space<vmem>>, vector<3x3xf32>
    %c9_10 = arith.constant 9 : index
    %c9_11 = arith.constant 9 : index
    %7 = vector.load %arg1[%c9_10, %c9_11] : memref<12x12xf32, #tpu.memory_space<vmem>>, vector<3x3xf32>
    %c0_12 = arith.constant 0 : index
    %c0_13 = arith.constant 0 : index
    %c0_14 = arith.constant 0 : index
    %8 = vector.load %arg0[%c0_12, %c0_13, %c0_14] : memref<2x3x3xf32, #tpu.memory_space<vmem>>, vector<1x3x3xf32>
    %9 = vector.shape_cast %8 : vector<1x3x3xf32> to vector<3x3xf32>
    %10 = vector.extract_strided_slice %9 {offsets = [0, 0], sizes = [1, 3], strides = [1, 1]} : vector<3x3xf32> to vector<1x3xf32>
    %11 = vector.broadcast %10 : vector<1x3xf32> to vector<9x3xf32>
    %12 = arith.mulf %0, %11 : vector<9x3xf32>
    %13 = arith.addf %3, %12 : vector<9x3xf32>
    %14 = vector.extract_strided_slice %9 {offsets = [1, 0], sizes = [1, 3], strides = [1, 1]} : vector<3x3xf32> to vector<1x3xf32>
    %15 = vector.broadcast %14 : vector<1x3xf32> to vector<9x3xf32>
    %16 = arith.mulf %1, %15 : vector<9x3xf32>
    %17 = arith.addf %13, %16 : vector<9x3xf32>
    %18 = vector.extract_strided_slice %9 {offsets = [2, 0], sizes = [1, 3], strides = [1, 1]} : vector<3x3xf32> to vector<1x3xf32>
    %19 = vector.broadcast %18 : vector<1x3xf32> to vector<9x3xf32>
    %20 = arith.mulf %2, %19 : vector<9x3xf32>
    %21 = arith.addf %17, %20 : vector<9x3xf32>
    %22 = vector.extract_strided_slice %21 {offsets = [6, 0], sizes = [3, 3], strides = [1, 1]} : vector<9x3xf32> to vector<3x3xf32>
    %23 = vector.extract_strided_slice %22 {offsets = [0, 0], sizes = [1, 3], strides = [1, 1]} : vector<3x3xf32> to vector<1x3xf32>
    %24 = vector.broadcast %23 : vector<1x3xf32> to vector<3x3xf32>
    %25 = arith.mulf %4, %24 : vector<3x3xf32>
    %26 = arith.addf %7, %25 : vector<3x3xf32>
    %27 = vector.extract_strided_slice %22 {offsets = [1, 0], sizes = [1, 3], strides = [1, 1]} : vector<3x3xf32> to vector<1x3xf32>
    %28 = vector.broadcast %27 : vector<1x3xf32> to vector<3x3xf32>
    %29 = arith.mulf %5, %28 : vector<3x3xf32>
    %30 = arith.addf %26, %29 : vector<3x3xf32>
    %31 = vector.extract_strided_slice %22 {offsets = [2, 0], sizes = [1, 3], strides = [1, 1]} : vector<3x3xf32> to vector<1x3xf32>
    %32 = vector.broadcast %31 : vector<1x3xf32> to vector<3x3xf32>
    %33 = arith.mulf %6, %32 : vector<3x3xf32>
    %34 = arith.addf %30, %33 : vector<3x3xf32>
    %c0_15 = arith.constant 0 : index
    %c0_16 = arith.constant 0 : index
    %c0_17 = arith.constant 0 : index
    %35 = vector.load %arg2[%c0_15, %c0_16, %c0_17] : memref<2x3x3xf32, #tpu.memory_space<vmem>>, vector<1x3x3xf32>
    %36 = vector.shape_cast %35 : vector<1x3x3xf32> to vector<3x3xf32>
    %37 = vector.shape_cast %34 : vector<3x3xf32> to vector<1x3x3xf32>
    tpu.vector_store %arg2[%c0_15, %c0_16, %c0_17], %37 {strides = array<i32>} : memref<2x3x3xf32, #tpu.memory_space<vmem>>, vector<1x3x3xf32>,
    %c1 = arith.constant 1 : index
    %c0_18 = arith.constant 0 : index
    %c0_19 = arith.constant 0 : index
    %38 = vector.load %arg0[%c1, %c0_18, %c0_19] : memref<2x3x3xf32, #tpu.memory_space<vmem>>, vector<1x3x3xf32>
    %39 = vector.shape_cast %38 : vector<1x3x3xf32> to vector<3x3xf32>
    %40 = vector.extract_strided_slice %39 {offsets = [0, 0], sizes = [1, 3], strides = [1, 1]} : vector<3x3xf32> to vector<1x3xf32>
    %41 = vector.broadcast %40 : vector<1x3xf32> to vector<9x3xf32>
    %42 = arith.mulf %0, %41 : vector<9x3xf32>
    %43 = arith.addf %3, %42 : vector<9x3xf32>
    %44 = vector.extract_strided_slice %39 {offsets = [1, 0], sizes = [1, 3], strides = [1, 1]} : vector<3x3xf32> to vector<1x3xf32>
    %45 = vector.broadcast %44 : vector<1x3xf32> to vector<9x3xf32>
    %46 = arith.mulf %1, %45 : vector<9x3xf32>
    %47 = arith.addf %43, %46 : vector<9x3xf32>
    %48 = vector.extract_strided_slice %39 {offsets = [2, 0], sizes = [1, 3], strides = [1, 1]} : vector<3x3xf32> to vector<1x3xf32>
    %49 = vector.broadcast %48 : vector<1x3xf32> to vector<9x3xf32>
    %50 = arith.mulf %2, %49 : vector<9x3xf32>
    %51 = arith.addf %47, %50 : vector<9x3xf32>
    %52 = vector.extract_strided_slice %51 {offsets = [6, 0], sizes = [3, 3], strides = [1, 1]} : vector<9x3xf32> to vector<3x3xf32>
    %53 = vector.extract_strided_slice %52 {offsets = [0, 0], sizes = [1, 3], strides = [1, 1]} : vector<3x3xf32> to vector<1x3xf32>
    %54 = vector.broadcast %53 : vector<1x3xf32> to vector<3x3xf32>
    %55 = arith.mulf %4, %54 : vector<3x3xf32>
    %56 = arith.addf %7, %55 : vector<3x3xf32>
    %57 = vector.extract_strided_slice %52 {offsets = [1, 0], sizes = [1, 3], strides = [1, 1]} : vector<3x3xf32> to vector<1x3xf32>
    %58 = vector.broadcast %57 : vector<1x3xf32> to vector<3x3xf32>
    %59 = arith.mulf %5, %58 : vector<3x3xf32>
    %60 = arith.addf %56, %59 : vector<3x3xf32>
    %61 = vector.extract_strided_slice %52 {offsets = [2, 0], sizes = [1, 3], strides = [1, 1]} : vector<3x3xf32> to vector<1x3xf32>
    %62 = vector.broadcast %61 : vector<1x3xf32> to vector<3x3xf32>
    %63 = arith.mulf %6, %62 : vector<3x3xf32>
    %64 = arith.addf %60, %63 : vector<3x3xf32>
    %c1_20 = arith.constant 1 : index
    %c0_21 = arith.constant 0 : index
    %c0_22 = arith.constant 0 : index
    %65 = vector.load %arg2[%c1_20, %c0_21, %c0_22] : memref<2x3x3xf32, #tpu.memory_space<vmem>>, vector<1x3x3xf32>
    %66 = vector.shape_cast %65 : vector<1x3x3xf32> to vector<3x3xf32>
    %67 = vector.shape_cast %64 : vector<3x3xf32> to vector<1x3x3xf32>
    tpu.vector_store %arg2[%c1_20, %c0_21, %c0_22], %67 {strides = array<i32>} : memref<2x3x3xf32, #tpu.memory_space<vmem>>, vector<1x3x3xf32>,
    return
  }
}

</mosaic_0001>

<bundles_post_ra>
// kernel: window_attention_fwd.1
= control target key start
LH: loop header
LB: loop body
LE: loop exit
PB: predicated region body
PF: predicated region fallthrough
CT: control target
= control target key end

     0   :  { %v15_v0 = vlaneseq  ;;  %s237_s13 = smov 3   ;;  %s238_s14 = smov 6   ;;  %vm117_vm0 = vcmask 18432   ;;  %s318_s0 = inlined_call_operand.vmem [shape: f32[2,3,3], index: 0, kind: input, shape index: {}]   ;;  %s319_s1 = inlined_call_operand.vmem [shape: f32[12,12], index: 1, kind: input, shape index: {}]   ;;  %s320_s2 = inlined_call_operand.vmem [shape: f32[2,3,3], index: 2, kind: output, shape index: {}]  }
   0x1   :  { %v14_v2 = vld [vmem:[%s318_s0] sm:$0x7]  ;;  %v229_v6 = vld [vmem:[%s318_s0 + $0x4] sm:$0x7]  ;;  %v12_v16 = vld [vmem:[%s319_s1 + $0x8] sm:$0x1] }
   0x2   :  { %v258_v1 = vshrl.u32 %v15_v0, 7  ;;  %v11_v12 = vld [vmem:[%s319_s1] sm:$0xff]  ;;  %s239_s18 = smov 9   ;;  %s240_s19 = smov 119   ;;  %v13_v63 = vld [vmem:[%s319_s1 + $0x9] sm:$0x7] }
   0x3   :  { %s241_s20 = smov 122   ;;  %s242_s21 = smov 125  }
   0x4   :  { %v33_v3 = vsub.s32 1, %v258_v1  ;;  %v53_v4 = vsub.s32 2, %v258_v1  ;;  %v266_v5 = vsub.s32 0, %v258_v1  ;;  %v73_v40 = vsub.s32 6, %v258_v1 }
   0x5   :  { %v87_v46 = vsub.s32 7, %v258_v1 }
   0x6   :  { %v34_v7 = vrot.slane %v14_v2, %v33_v3  ;;  %v54_v8 = vrot.slane %v14_v2, %v53_v4  ;;  %v140_v9 = vrot.slane %v229_v6, %v33_v3  ;;  %v160_v10 = vrot.slane %v229_v6, %v53_v4 }
   0x7   :  { %v18_v11 = vrot.slane %v14_v2, %v266_v5  ;;  %v124_v13 = vrot.slane %v229_v6, %v266_v5 }
   0x8   :  { %36 = vrot.lane.b32.xlu0 %v34_v7, %s237_s13  ;;  %56 = vrot.lane.b32.xlu1 %v54_v8, %s238_s14 }
   0x9   :  { %v19_v14 = vmul.f32 %v18_v11, %v11_v12  ;;  %v125_v15 = vmul.f32 %v124_v13, %v11_v12  ;;  %v20_v17 = vmul.f32 %v18_v11, %v12_v16  ;;  %v126_v18 = vmul.f32 %v124_v13, %v12_v16 }
   0xc   :  { %142 = vrot.lane.b32.xlu0 %v140_v9, %s237_s13  ;;  %162 = vrot.lane.b32.xlu1 %v160_v10, %s238_s14 }
  0x10   :  { %23 = vrot.lane.b32.xlu0 %v19_v14, %s239_s18  ;;  %129 = vrot.lane.b32.xlu1 %v125_v15, %s239_s18 }
  0x14   :  { %25 = vrot.lane.b32.xlu0 %v20_v17, %s239_s18 }
  0x18   :  { %131 = vrot.lane.b32.xlu0 %v126_v18, %s239_s18 }
  0x7a   :  { %v37_v19 = vpop.permute.xlu0 %36  ;;  %v57_v21 = vpop.permute.xlu1 %56 }
  0x7b   :  { %v39_v20 = vmul.f32 %v37_v19, %v11_v12  ;;  %v40_v23 = vmul.f32 %v37_v19, %v12_v16  ;;  %v59_v25 = vmul.f32 %v57_v21, %v11_v12  ;;  %v60_v26 = vmul.f32 %v57_v21, %v12_v16 }
  0x7d   :  { %43 = vrot.lane.b32.xlu0 %v39_v20, %s238_s14 }
  0x7e   :  { %v143_v22 = vpop.permute.xlu0 %142  ;;  %v163_v27 = vpop.permute.xlu1 %162 }
  0x7f   :  { %v145_v24 = vmul.f32 %v143_v22, %v11_v12  ;;  %v165_v28 = vmul.f32 %v163_v27, %v11_v12  ;;  %v146_v29 = vmul.f32 %v143_v22, %v12_v16  ;;  %v166_v30 = vmul.f32 %v163_v27, %v12_v16 }
  0x81   :  { %149 = vrot.lane.b32.xlu1 %v145_v24, %s238_s14  ;;  %45 = vrot.lane.b32.xlu0 %v40_v23, %s238_s14 }
  0x82   :  { %v24_v31 = vpop.permute.xlu0 %23  ;;  %v130_v34 = vpop.permute.xlu1 %129 }
  0x83   :  { %v29_v36 = vadd.f32 %v24_v31, %v11_v12  ;;  %v135_v43 = vadd.f32 %v130_v34, %v11_v12 }
  0x85   :  { %63 = vrot.lane.b32.xlu1 %v59_v25, %s237_s13  ;;  %65 = vrot.lane.b32.xlu0 %v60_v26, %s237_s13 }
  0x86   :  { %v26_v32 = vpop.permute.xlu0 %25 }
  0x87   :  { %v30_v42 = vadd.f32 %v26_v32, %v12_v16 }
  0x89   :  { %169 = vrot.lane.b32.xlu1 %v165_v28, %s237_s13 }
  0x8a   :  { %v132_v33 = vpop.permute.xlu0 %131 }
  0x8b   :  { %v136_v56 = vadd.f32 %v132_v33, %v12_v16 }
  0x8d   :  { %151 = vrot.lane.b32.xlu1 %v146_v29, %s238_s14 }
  0x91   :  { %171 = vrot.lane.b32.xlu1 %v166_v30, %s237_s13 }
  0xef   :  { %v44_v35 = vpop.permute.xlu0 %43 }
  0xf0   :  { %v49_v39 = vadd.f32 %v44_v35, %v29_v36 }
  0xf3   :  { %v150_v37 = vpop.permute.xlu1 %149  ;;  %v46_v38 = vpop.permute.xlu0 %45 }
  0xf4   :  { %v155_v45 = vadd.f32 %v150_v37, %v135_v43  ;;  %v50_v50 = vadd.f32 %v46_v38, %v30_v42 }
  0xf7   :  { %v64_v41 = vpop.permute.xlu1 %63  ;;  %v66_v48 = vpop.permute.xlu0 %65 }
  0xf8   :  { %v69_v44 = vadd.f32 %v64_v41, %v49_v39  ;;  %v70_v53 = vadd.f32 %v66_v48, %v50_v50 }
  0xfa   :  { %v74_v47 = vrot.slane %v69_v44, %v73_v40  ;;  %v88_v52 = vrot.slane %v69_v44, %v87_v46  ;;  %v102_v57 = vrot.slane %v70_v53, %v266_v5 }
  0xfb   :  { %v170_v49 = vpop.permute.xlu1 %169 }
  0xfc   :  { %v175_v51 = vadd.f32 %v170_v49, %v155_v45  ;;  %76 = vrot.lane.b32.xlu0 %v74_v47, %s240_s19 }
  0xfe   :  { %v180_v54 = vrot.slane %v175_v51, %v73_v40  ;;  %v194_v58 = vrot.slane %v175_v51, %v87_v46 }
  0xff   :  { %v152_v55 = vpop.permute.xlu1 %151 }
 0x100   :  { %182 = vrot.lane.b32.xlu1 %v180_v54, %s240_s19  ;;  %90 = vrot.lane.b32.xlu0 %v88_v52, %s241_s20  ;;  %v156_v59 = vadd.f32 %v152_v55, %v136_v56 }
 0x103   :  { %v172_v60 = vpop.permute.xlu1 %171 }
 0x104   :  { %v176_v61 = vadd.f32 %v172_v60, %v156_v59  ;;  %196 = vrot.lane.b32.xlu1 %v194_v58, %s241_s20  ;;  %104 = vrot.lane.b32.xlu0 %v102_v57, %s242_s21 }
 0x106   :  { %v208_v62 = vrot.slane %v176_v61, %v266_v5 }
 0x108   :  { %210 = vrot.lane.b32.xlu1 %v208_v62, %s242_s21 }
 0x16e   :  { %v77_v0 = vpop.permute.xlu0 %76 }
 0x16f   :  { %v79_v1 = vmul.f32 %v77_v0, %v13_v63 }
 0x171   :  { %81 = vrot.lane.b32.xlu0 %v79_v1, %s239_s18 }
 0x172   :  { %v183_v2 = vpop.permute.xlu1 %182  ;;  %v91_v3 = vpop.permute.xlu0 %90 }
 0x173   :  { %v185_v4 = vmul.f32 %v183_v2, %v13_v63  ;;  %v93_v6 = vmul.f32 %v91_v3, %v13_v63 }
 0x175   :  { %187 = vrot.lane.b32.xlu1 %v185_v4, %s239_s18  ;;  %95 = vrot.lane.b32.xlu0 %v93_v6, %s238_s14 }
 0x176   :  { %v197_v7 = vpop.permute.xlu1 %196  ;;  %v105_v8 = vpop.permute.xlu0 %104 }
 0x177   :  { %v199_v5 = vmul.f32 %v197_v7, %v13_v63  ;;  %v107_v9 = vmul.f32 %v105_v8, %v13_v63 }
 0x179   :  { %201 = vrot.lane.b32.xlu1 %v199_v5, %s238_s14  ;;  %109 = vrot.lane.b32.xlu0 %v107_v9, %s237_s13 }
 0x17a   :  { %v211_v10 = vpop.permute.xlu1 %210 }
 0x17b   :  { %v213_v11 = vmul.f32 %v211_v10, %v13_v63 }
 0x17d   :  { %215 = vrot.lane.b32.xlu1 %v213_v11, %s237_s13 }
 0x1e3   :  { %v82_v12 = vpop.permute.xlu0 %81 }
 0x1e4   :  { %v84_v15 = vadd.f32 %v82_v12, %v13_v63 }
 0x1e7   :  { %v188_v13 = vpop.permute.xlu1 %187  ;;  %v96_v14 = vpop.permute.xlu0 %95 }
 0x1e8   :  { %v98_v16 = vadd.f32 %v96_v14, %v84_v15  ;;  %v190_v19 = vadd.f32 %v188_v13, %v13_v63 }
 0x1eb   :  { %v202_v17 = vpop.permute.xlu1 %201  ;;  %v110_v18 = vpop.permute.xlu0 %109 }
 0x1ec   :  { %v112_v20 = vadd.f32 %v110_v18, %v98_v16  ;;  %v204_v21 = vadd.f32 %v202_v17, %v190_v19 }
 0x1ee   :  { %114 = vrot.lane.b32.xlu0 %v112_v20, %s240_s19 }
 0x1ef   :  { %v216_v22 = vpop.permute.xlu1 %215 }
 0x1f0   :  { %v218_v23 = vadd.f32 %v216_v22, %v204_v21 }
 0x1f2   :  { %220 = vrot.lane.b32.xlu1 %v218_v23, %s240_s19 }
 0x260   :  { %v115_v24 = vpop.permute.xlu0 %114 }
 0x261   :  { %118 = vst.msk [vmem:[%s320_s2] sm:$0x7] %vm117_vm0, %v115_v24 }
 0x264   :  { %v221_v25 = vpop.permute.xlu1 %220 }
 0x265   :  { %230 = vst.msk [vmem:[%s320_s2 + $0x4] sm:$0x7] %vm117_vm0, %v221_v25 }

</bundles_post_ra>
